<compile_context>
chip_gen: v5e
topology: v5e:2x2
jax: 0.10.0
libtpu: 0.0.40
codegen_flags: <defaults>
</compile_context>

<pallas_src>
import functools

import jax
import jax.numpy as jnp
from jax import lax
from jax.experimental import pallas as pl
from jax.experimental.pallas import tpu as pltpu


def _round_up(x, m):
    return (x + m - 1) // m * m


def _cdiv(a, b):
    return (a + b - 1) // b


def _choose_batch_block(batch, n_sel, target_rows=256):
    # Target ~256 LHS rows per grid step to fill the 256-wide MXU systolic dim,
    # but always keep >= 2 grid blocks when the batch allows it (v7x megacore).
    bb = max(1, min(batch, max(1, target_rows // n_sel)))
    if batch > 1 and _cdiv(batch, bb) < 2:
        bb = _cdiv(batch, 2)
    return bb


def _patch_embed_shuffle_kernel(ids_ref, x_hbm, w_ref, b_ref, o_ref,
                                xs_ref, sem, *, rows_per_block, unroll):
    # ids_ref: SMEM (B_pad*n_sel,) int32   flat HBM row ids (b*N + shuffle idx)
    # x_hbm  : HBM  (B*N, Kp)              flattened patch pixels (never tiled)
    # w_ref  : VMEM (Kp, Dp)               flattened Conv2d weight
    # b_ref  : VMEM (1, Dp)                Conv2d bias
    # o_ref  : VMEM (rows_per_block, Dp)   selected patch embeddings
    # xs_ref : VMEM scratch (rows_per_block, Kp)  gathered matmul LHS
    # sem    : DMA semaphore (shared by all row copies of this step)
    g = pl.program_id(0)
    base = g * rows_per_block

    # ---- DMA gather: only the selected patch rows cross HBM -> VMEM. ----
    def _start(r, carry):
        src = ids_ref[base + r]
        pltpu.make_async_copy(x_hbm.at[pl.ds(src, 1), :],
                              xs_ref.at[pl.ds(r, 1), :],
                              sem).start()
        return carry

    lax.fori_loop(0, rows_per_block, _start, 0, unroll=unroll)

    def _wait(r, carry):
        # Same-shaped dummy descriptor: each wait retires one (1, Kp) row copy.
        pltpu.make_async_copy(x_hbm.at[pl.ds(0, 1), :],
                              xs_ref.at[pl.ds(0, 1), :],
                              sem).wait()
        return carry

    lax.fori_loop(0, rows_per_block, _wait, 0, unroll=unroll)

    # ---- Patch-embedding conv == one big MXU matmul on the kept rows. ----
    emb = jnp.dot(xs_ref[...], w_ref[...], preferred_element_type=jnp.float32)
    o_ref[...] = (emb + b_ref[...]).astype(o_ref.dtype)


def patch_embedding_with_shuffle(x, weight, bias, key, *,
                                 num_patch_row, mask_ratio,
                                 batch_block=None, compute_dtype=None):
    """Mirrors PatchEmbeddingWithShuffle.forward.

    Returns (z0, (forward_indexes, backward_indexes)):
      z0:               (B, remain, D) float32
      forward_indexes:  (B, N) int32
      backward_indexes: (B, N) int32
    """
    B, C, H, W = x.shape
    P = H // num_patch_row
    N = num_patch_row ** 2
    K = C * P * P
    D = weight.shape[0]
    remain = int(N * (1.0 - mask_ratio))     # same int() truncation as PyTorch

    # ---- glue: patch extraction + parameter flattening (plain JAX / XLA). ----
    patches = x.reshape(B, C, num_patch_row, P, num_patch_row, P)
    patches = patches.transpose(0, 2, 4, 1, 3, 5).reshape(B * N, K)
    w2d = weight.reshape(D, K).T             # (K, D)

    # Lane-dense contraction and embedding dims.
    Kp = _round_up(K, 128)
    Dp = _round_up(D, 128)
    if Kp != K:
        patches = jnp.pad(patches, ((0, 0), (0, Kp - K)))
        w2d = jnp.pad(w2d, ((0, Kp - K), (0, 0)))
    if Dp != D:
        w2d = jnp.pad(w2d, ((0, 0), (0, Dp - D)))
        b2d = jnp.pad(bias.reshape(1, D), ((0, 0), (0, Dp - D)))
    else:
        b2d = bias.reshape(1, D)

    if compute_dtype is not None:            # e.g. jnp.bfloat16 on v6e/v7x
        patches = patches.astype(compute_dtype)
        w2d = w2d.astype(compute_dtype)

    # ---- glue: PatchShuffle index generation (torch.randperm analogue).
    # Matches the module: index 0 (cls-token slot) is always kept first, then a
    # random permutation of 1..N-1. int32 because JAX runs without x64.
    perm_keys = jax.random.split(key, B)
    perms = jax.vmap(lambda k: jax.random.permutation(k, N - 1))(perm_keys)
    fwd = jnp.concatenate(
        [jnp.zeros((B, 1), jnp.int32), perms.astype(jnp.int32) + 1], axis=1)
    bwd = jnp.argsort(fwd, axis=1).astype(jnp.int32)

    # Sublane padding of the kept-row count (bf16 packs 2 rows per sublane).
    row_align = 16 if patches.dtype == jnp.bfloat16 else 8
    n_sel = _round_up(max(remain, 1), row_align)

    # Batch blocking (pad B to a multiple of batch_block instead of asserting).
    if batch_block is None:
        batch_block = _choose_batch_block(B, n_sel)
    num_blocks = _cdiv(B, batch_block)
    B_pad = num_blocks * batch_block
    rows_per_block = batch_block * n_sel

    # Flat HBM row ids for the DMA gather: b*N + fwd[b, r]; padded rows / padded
    # batches reuse row 0 (valid, garbage, sliced off afterwards).
    flat = fwd[:, :remain] + (jnp.arange(B, dtype=jnp.int32) * N)[:, None]
    flat_ids = jnp.zeros((B_pad, n_sel), jnp.int32)
    flat_ids = flat_ids.at[:B, :remain].set(flat).reshape(B_pad * n_sel)

    unroll = rows_per_block if rows_per_block <= 32 else 8
    kernel = functools.partial(_patch_embed_shuffle_kernel,
                               rows_per_block=rows_per_block, unroll=unroll)

    # VMEM budget (xs scratch + double-buffered out/w/bias); only raise the
    # scoped limit when the default 16 MiB would be exceeded.
    itemsize = patches.dtype.itemsize
    vmem_bytes = (rows_per_block * Kp * itemsize
                  + 2 * rows_per_block * Dp * 4
                  + 2 * Kp * Dp * w2d.dtype.itemsize
                  + 2 * Dp * 4)
    vmem_limit = None
    if 2 * vmem_bytes > (16 << 20):
        vmem_limit = int(min(64 << 20, 2 * vmem_bytes))

    z_pad = pl.pallas_call(
        kernel,
        out_shape=jax.ShapeDtypeStruct((B_pad * n_sel, Dp), jnp.float32),
        grid_spec=pltpu.PrefetchScalarGridSpec(
            num_scalar_prefetch=1,
            grid=(num_blocks,),
            in_specs=[
                pl.BlockSpec(memory_space=pl.ANY),                 # x stays in HBM
                pl.BlockSpec((Kp, Dp), lambda g, ids: (0, 0)),     # weight
                pl.BlockSpec((1, Dp), lambda g, ids: (0, 0)),      # bias
            ],
            out_specs=pl.BlockSpec((rows_per_block, Dp),
                                   lambda g, ids: (g, 0)),
            scratch_shapes=[
                pltpu.VMEM((rows_per_block, Kp), patches.dtype),   # gathered LHS
                pltpu.SemaphoreType.DMA(()),                       # shared row sem
            ],
        ),
        compiler_params=pltpu.CompilerParams(
            dimension_semantics=("parallel",),     # batch blocks are independent
            vmem_limit_bytes=vmem_limit),
    )(flat_ids, patches, w2d, b2d)

    z0 = z_pad.reshape(B_pad, n_sel, Dp)[:B, :remain, :D]
    return z0, (fwd, bwd)


if __name__ == "__main__":
    # Small shapes consistent with the module's forward pass.
    B = 2
    input_channels = 4
    emb_dim = 32
    num_patch_row = 4
    image_size = 16
    mask_ratio = 0.75
    patch_size = image_size // num_patch_row        # 4
    N = num_patch_row ** 2                           # 16
    K = input_channels * patch_size * patch_size     # 64
    remain = int(N * (1.0 - mask_ratio))             # 4

    root = jax.random.PRNGKey(0)
    kx, kw, kb, kperm = jax.random.split(root, 4)

    x = jax.random.normal(kx, (B, input_channels, image_size, image_size),
                          jnp.float32)

    # Deterministic Conv2d-style params (kaiming-uniform-ish bounds).
    bound = 1.0 / (K ** 0.5)
    weight = jax.random.uniform(
        kw, (emb_dim, input_channels, patch_size, patch_size),
        jnp.float32, -bound, bound)
    bias = jax.random.uniform(kb, (emb_dim,), jnp.float32, -bound, bound)

    z0, (fwd, bwd) = patch_embedding_with_shuffle(
        x, weight, bias, kperm,
        num_patch_row=num_patch_row, mask_ratio=mask_ratio)
    z0 = jax.block_until_ready(z0)

    # Pure-JAX reference of the same forward pass (conv -> flatten/transpose
    # -> gather(forward_indexes) -> keep first `remain` patches).
    patches = x.reshape(B, input_channels, num_patch_row, patch_size,
                        num_patch_row, patch_size)
    patches = patches.transpose(0, 2, 4, 1, 3, 5).reshape(B, N, K)
    ref_full = jnp.einsum("bnk,kd->bnd", patches,
                          weight.reshape(emb_dim, K).T) + bias
    ref = jnp.take_along_axis(ref_full, fwd[:, :, None], axis=1)[:, :remain, :]

    assert z0.shape == (B, remain, emb_dim)
    assert fwd.shape == (B, N) and bwd.shape == (B, N)
    assert bool(jnp.all(jnp.take_along_axis(fwd, bwd, axis=1)
                        == jnp.arange(N)[None, :]))
    assert bool(jnp.allclose(z0, ref, atol=1e-3, rtol=1e-3))

    print("KERNEL_OK")
</pallas_src>

<mosaic_0001>
module attributes {stable_mosaic.version = 11 : i64} {
  func.func @_patch_embed_shuffle_kernel(%arg0: i32, %arg1: memref<16xi32, #tpu.memory_space<smem>>, %arg2: memref<32x128xf32, #tpu.memory_space<any>>, %arg3: memref<128x128xf32, #tpu.memory_space<vmem>>, %arg4: memref<1x128xf32, #tpu.memory_space<vmem>>, %arg5: memref<8x128xf32, #tpu.memory_space<vmem>>, %arg6: memref<8x128xf32, #tpu.memory_space<vmem>>, %arg7: memref<!tpu.dma_semaphore, #tpu.memory_space<semaphore_mem>>) attributes {dimension_semantics = [#tpu.dimension_semantics<parallel>], iteration_bounds = array<i64: 2>, scalar_prefetch = 1 : i64, scratch_operands = 2 : i64, tpu.core_type = #tpu.core_type<tc>, window_params = [{}, {pipeline_mode = #tpu.pipeline_mode<synchronous>, transform_indices = @transform_1, window_bounds = array<i64: 128, 128>}, {pipeline_mode = #tpu.pipeline_mode<synchronous>, transform_indices = @transform_2, window_bounds = array<i64: 1, 128>}, {transform_indices = @transform_3, window_bounds = array<i64: 8, 128>}]} {
    %c8_i32 = arith.constant 8 : i32
    %0 = arith.muli %arg0, %c8_i32 : i32
    %c0_i32 = arith.constant 0 : i32
    %1 = arith.addi %0, %c0_i32 : i32
    %2 = arith.index_cast %1 : i32 to index
    %3 = memref.load %arg1[%2] : memref<16xi32, #tpu.memory_space<smem>>
    %c0_i32_0 = arith.constant 0 : i32
    %4 = tpu.memref_slice %arg2[%3, %c0_i32_0] : memref<32x128xf32, #tpu.memory_space<any>> -> memref<1x128xf32, #tpu.memory_space<any>>
    %c0_i32_1 = arith.constant 0 : i32
    %5 = tpu.memref_slice %arg6[%c0_i32, %c0_i32_1] : memref<8x128xf32, #tpu.memory_space<vmem>> -> memref<1x128xf32, #tpu.memory_space<vmem>>
    tpu.enqueue_dma source(%4 : memref<1x128xf32, #tpu.memory_space<any>>) target(%5 : memref<1x128xf32, #tpu.memory_space<vmem>>) target_semaphore(%arg7 : memref<!tpu.dma_semaphore, #tpu.memory_space<semaphore_mem>>)
    %c1_i32 = arith.constant 1 : i32
    %6 = arith.addi %0, %c1_i32 : i32
    %7 = arith.index_cast %6 : i32 to index
    %8 = memref.load %arg1[%7] : memref<16xi32, #tpu.memory_space<smem>>
    %c0_i32_2 = arith.constant 0 : i32
    %9 = tpu.memref_slice %arg2[%8, %c0_i32_2] : memref<32x128xf32, #tpu.memory_space<any>> -> memref<1x128xf32, #tpu.memory_space<any>>
    %c0_i32_3 = arith.constant 0 : i32
    %10 = tpu.memref_slice %arg6[%c1_i32, %c0_i32_3] : memref<8x128xf32, #tpu.memory_space<vmem>> -> memref<1x128xf32, #tpu.memory_space<vmem>>
    tpu.enqueue_dma source(%9 : memref<1x128xf32, #tpu.memory_space<any>>) target(%10 : memref<1x128xf32, #tpu.memory_space<vmem>>) target_semaphore(%arg7 : memref<!tpu.dma_semaphore, #tpu.memory_space<semaphore_mem>>)
    %c2_i32 = arith.constant 2 : i32
    %11 = arith.addi %0, %c2_i32 : i32
    %12 = arith.index_cast %11 : i32 to index
    %13 = memref.load %arg1[%12] : memref<16xi32, #tpu.memory_space<smem>>
    %c0_i32_4 = arith.constant 0 : i32
    %14 = tpu.memref_slice %arg2[%13, %c0_i32_4] : memref<32x128xf32, #tpu.memory_space<any>> -> memref<1x128xf32, #tpu.memory_space<any>>
    %c0_i32_5 = arith.constant 0 : i32
    %15 = tpu.memref_slice %arg6[%c2_i32, %c0_i32_5] : memref<8x128xf32, #tpu.memory_space<vmem>> -> memref<1x128xf32, #tpu.memory_space<vmem>>
    tpu.enqueue_dma source(%14 : memref<1x128xf32, #tpu.memory_space<any>>) target(%15 : memref<1x128xf32, #tpu.memory_space<vmem>>) target_semaphore(%arg7 : memref<!tpu.dma_semaphore, #tpu.memory_space<semaphore_mem>>)
    %c3_i32 = arith.constant 3 : i32
    %16 = arith.addi %0, %c3_i32 : i32
    %17 = arith.index_cast %16 : i32 to index
    %18 = memref.load %arg1[%17] : memref<16xi32, #tpu.memory_space<smem>>
    %c0_i32_6 = arith.constant 0 : i32
    %19 = tpu.memref_slice %arg2[%18, %c0_i32_6] : memref<32x128xf32, #tpu.memory_space<any>> -> memref<1x128xf32, #tpu.memory_space<any>>
    %c0_i32_7 = arith.constant 0 : i32
    %20 = tpu.memref_slice %arg6[%c3_i32, %c0_i32_7] : memref<8x128xf32, #tpu.memory_space<vmem>> -> memref<1x128xf32, #tpu.memory_space<vmem>>
    tpu.enqueue_dma source(%19 : memref<1x128xf32, #tpu.memory_space<any>>) target(%20 : memref<1x128xf32, #tpu.memory_space<vmem>>) target_semaphore(%arg7 : memref<!tpu.dma_semaphore, #tpu.memory_space<semaphore_mem>>)
    %c4_i32 = arith.constant 4 : i32
    %21 = arith.addi %0, %c4_i32 : i32
    %22 = arith.index_cast %21 : i32 to index
    %23 = memref.load %arg1[%22] : memref<16xi32, #tpu.memory_space<smem>>
    %c0_i32_8 = arith.constant 0 : i32
    %24 = tpu.memref_slice %arg2[%23, %c0_i32_8] : memref<32x128xf32, #tpu.memory_space<any>> -> memref<1x128xf32, #tpu.memory_space<any>>
    %c0_i32_9 = arith.constant 0 : i32
    %25 = tpu.memref_slice %arg6[%c4_i32, %c0_i32_9] : memref<8x128xf32, #tpu.memory_space<vmem>> -> memref<1x128xf32, #tpu.memory_space<vmem>>
    tpu.enqueue_dma source(%24 : memref<1x128xf32, #tpu.memory_space<any>>) target(%25 : memref<1x128xf32, #tpu.memory_space<vmem>>) target_semaphore(%arg7 : memref<!tpu.dma_semaphore, #tpu.memory_space<semaphore_mem>>)
    %c5_i32 = arith.constant 5 : i32
    %26 = arith.addi %0, %c5_i32 : i32
    %27 = arith.index_cast %26 : i32 to index
    %28 = memref.load %arg1[%27] : memref<16xi32, #tpu.memory_space<smem>>
    %c0_i32_10 = arith.constant 0 : i32
    %29 = tpu.memref_slice %arg2[%28, %c0_i32_10] : memref<32x128xf32, #tpu.memory_space<any>> -> memref<1x128xf32, #tpu.memory_space<any>>
    %c0_i32_11 = arith.constant 0 : i32
    %30 = tpu.memref_slice %arg6[%c5_i32, %c0_i32_11] : memref<8x128xf32, #tpu.memory_space<vmem>> -> memref<1x128xf32, #tpu.memory_space<vmem>>
    tpu.enqueue_dma source(%29 : memref<1x128xf32, #tpu.memory_space<any>>) target(%30 : memref<1x128xf32, #tpu.memory_space<vmem>>) target_semaphore(%arg7 : memref<!tpu.dma_semaphore, #tpu.memory_space<semaphore_mem>>)
    %c6_i32 = arith.constant 6 : i32
    %31 = arith.addi %0, %c6_i32 : i32
    %32 = arith.index_cast %31 : i32 to index
    %33 = memref.load %arg1[%32] : memref<16xi32, #tpu.memory_space<smem>>
    %c0_i32_12 = arith.constant 0 : i32
    %34 = tpu.memref_slice %arg2[%33, %c0_i32_12] : memref<32x128xf32, #tpu.memory_space<any>> -> memref<1x128xf32, #tpu.memory_space<any>>
    %c0_i32_13 = arith.constant 0 : i32
    %35 = tpu.memref_slice %arg6[%c6_i32, %c0_i32_13] : memref<8x128xf32, #tpu.memory_space<vmem>> -> memref<1x128xf32, #tpu.memory_space<vmem>>
    tpu.enqueue_dma source(%34 : memref<1x128xf32, #tpu.memory_space<any>>) target(%35 : memref<1x128xf32, #tpu.memory_space<vmem>>) target_semaphore(%arg7 : memref<!tpu.dma_semaphore, #tpu.memory_space<semaphore_mem>>)
    %c7_i32 = arith.constant 7 : i32
    %36 = arith.addi %0, %c7_i32 : i32
    %37 = arith.index_cast %36 : i32 to index
    %38 = memref.load %arg1[%37] : memref<16xi32, #tpu.memory_space<smem>>
    %c0_i32_14 = arith.constant 0 : i32
    %39 = tpu.memref_slice %arg2[%38, %c0_i32_14] : memref<32x128xf32, #tpu.memory_space<any>> -> memref<1x128xf32, #tpu.memory_space<any>>
    %c0_i32_15 = arith.constant 0 : i32
    %40 = tpu.memref_slice %arg6[%c7_i32, %c0_i32_15] : memref<8x128xf32, #tpu.memory_space<vmem>> -> memref<1x128xf32, #tpu.memory_space<vmem>>
    tpu.enqueue_dma source(%39 : memref<1x128xf32, #tpu.memory_space<any>>) target(%40 : memref<1x128xf32, #tpu.memory_space<vmem>>) target_semaphore(%arg7 : memref<!tpu.dma_semaphore, #tpu.memory_space<semaphore_mem>>)
    %c8_i32_16 = arith.constant 8 : i32
    %c0_i32_17 = arith.constant 0 : i32
    %c0_i32_18 = arith.constant 0 : i32
    %c0_i32_19 = arith.constant 0 : i32
    %41 = tpu.memref_slice %arg2[%c0_i32_18, %c0_i32_19] : memref<32x128xf32, #tpu.memory_space<any>> -> memref<1x128xf32, #tpu.memory_space<any>>
    %c0_i32_20 = arith.constant 0 : i32
    %c0_i32_21 = arith.constant 0 : i32
    %42 = tpu.memref_slice %arg6[%c0_i32_20, %c0_i32_21] : memref<8x128xf32, #tpu.memory_space<vmem>> -> memref<1x128xf32, #tpu.memory_space<vmem>>
    tpu.wait_dma2 semaphore(%arg7 : memref<!tpu.dma_semaphore, #tpu.memory_space<semaphore_mem>>) src(%41 : memref<1x128xf32, #tpu.memory_space<any>>) dst(%42 : memref<1x128xf32, #tpu.memory_space<vmem>>)
    %c1_i32_22 = arith.constant 1 : i32
    %c0_i32_23 = arith.constant 0 : i32
    %c0_i32_24 = arith.constant 0 : i32
    %43 = tpu.memref_slice %arg2[%c0_i32_23, %c0_i32_24] : memref<32x128xf32, #tpu.memory_space<any>> -> memref<1x128xf32, #tpu.memory_space<any>>
    %c0_i32_25 = arith.constant 0 : i32
    %c0_i32_26 = arith.constant 0 : i32
    %44 = tpu.memref_slice %arg6[%c0_i32_25, %c0_i32_26] : memref<8x128xf32, #tpu.memory_space<vmem>> -> memref<1x128xf32, #tpu.memory_space<vmem>>
    tpu.wait_dma2 semaphore(%arg7 : memref<!tpu.dma_semaphore, #tpu.memory_space<semaphore_mem>>) src(%43 : memref<1x128xf32, #tpu.memory_space<any>>) dst(%44 : memref<1x128xf32, #tpu.memory_space<vmem>>)
    %c2_i32_27 = arith.constant 2 : i32
    %c0_i32_28 = arith.constant 0 : i32
    %c0_i32_29 = arith.constant 0 : i32
    %45 = tpu.memref_slice %arg2[%c0_i32_28, %c0_i32_29] : memref<32x128xf32, #tpu.memory_space<any>> -> memref<1x128xf32, #tpu.memory_space<any>>
    %c0_i32_30 = arith.constant 0 : i32
    %c0_i32_31 = arith.constant 0 : i32
    %46 = tpu.memref_slice %arg6[%c0_i32_30, %c0_i32_31] : memref<8x128xf32, #tpu.memory_space<vmem>> -> memref<1x128xf32, #tpu.memory_space<vmem>>
    tpu.wait_dma2 semaphore(%arg7 : memref<!tpu.dma_semaphore, #tpu.memory_space<semaphore_mem>>) src(%45 : memref<1x128xf32, #tpu.memory_space<any>>) dst(%46 : memref<1x128xf32, #tpu.memory_space<vmem>>)
    %c3_i32_32 = arith.constant 3 : i32
    %c0_i32_33 = arith.constant 0 : i32
    %c0_i32_34 = arith.constant 0 : i32
    %47 = tpu.memref_slice %arg2[%c0_i32_33, %c0_i32_34] : memref<32x128xf32, #tpu.memory_space<any>> -> memref<1x128xf32, #tpu.memory_space<any>>
    %c0_i32_35 = arith.constant 0 : i32
    %c0_i32_36 = arith.constant 0 : i32
    %48 = tpu.memref_slice %arg6[%c0_i32_35, %c0_i32_36] : memref<8x128xf32, #tpu.memory_space<vmem>> -> memref<1x128xf32, #tpu.memory_space<vmem>>
    tpu.wait_dma2 semaphore(%arg7 : memref<!tpu.dma_semaphore, #tpu.memory_space<semaphore_mem>>) src(%47 : memref<1x128xf32, #tpu.memory_space<any>>) dst(%48 : memref<1x128xf32, #tpu.memory_space<vmem>>)
    %c4_i32_37 = arith.constant 4 : i32
    %c0_i32_38 = arith.constant 0 : i32
    %c0_i32_39 = arith.constant 0 : i32
    %49 = tpu.memref_slice %arg2[%c0_i32_38, %c0_i32_39] : memref<32x128xf32, #tpu.memory_space<any>> -> memref<1x128xf32, #tpu.memory_space<any>>
    %c0_i32_40 = arith.constant 0 : i32
    %c0_i32_41 = arith.constant 0 : i32
    %50 = tpu.memref_slice %arg6[%c0_i32_40, %c0_i32_41] : memref<8x128xf32, #tpu.memory_space<vmem>> -> memref<1x128xf32, #tpu.memory_space<vmem>>
    tpu.wait_dma2 semaphore(%arg7 : memref<!tpu.dma_semaphore, #tpu.memory_space<semaphore_mem>>) src(%49 : memref<1x128xf32, #tpu.memory_space<any>>) dst(%50 : memref<1x128xf32, #tpu.memory_space<vmem>>)
    %c5_i32_42 = arith.constant 5 : i32
    %c0_i32_43 = arith.constant 0 : i32
    %c0_i32_44 = arith.constant 0 : i32
    %51 = tpu.memref_slice %arg2[%c0_i32_43, %c0_i32_44] : memref<32x128xf32, #tpu.memory_space<any>> -> memref<1x128xf32, #tpu.memory_space<any>>
    %c0_i32_45 = arith.constant 0 : i32
    %c0_i32_46 = arith.constant 0 : i32
    %52 = tpu.memref_slice %arg6[%c0_i32_45, %c0_i32_46] : memref<8x128xf32, #tpu.memory_space<vmem>> -> memref<1x128xf32, #tpu.memory_space<vmem>>
    tpu.wait_dma2 semaphore(%arg7 : memref<!tpu.dma_semaphore, #tpu.memory_space<semaphore_mem>>) src(%51 : memref<1x128xf32, #tpu.memory_space<any>>) dst(%52 : memref<1x128xf32, #tpu.memory_space<vmem>>)
    %c6_i32_47 = arith.constant 6 : i32
    %c0_i32_48 = arith.constant 0 : i32
    %c0_i32_49 = arith.constant 0 : i32
    %53 = tpu.memref_slice %arg2[%c0_i32_48, %c0_i32_49] : memref<32x128xf32, #tpu.memory_space<any>> -> memref<1x128xf32, #tpu.memory_space<any>>
    %c0_i32_50 = arith.constant 0 : i32
    %c0_i32_51 = arith.constant 0 : i32
    %54 = tpu.memref_slice %arg6[%c0_i32_50, %c0_i32_51] : memref<8x128xf32, #tpu.memory_space<vmem>> -> memref<1x128xf32, #tpu.memory_space<vmem>>
    tpu.wait_dma2 semaphore(%arg7 : memref<!tpu.dma_semaphore, #tpu.memory_space<semaphore_mem>>) src(%53 : memref<1x128xf32, #tpu.memory_space<any>>) dst(%54 : memref<1x128xf32, #tpu.memory_space<vmem>>)
    %c7_i32_52 = arith.constant 7 : i32
    %c0_i32_53 = arith.constant 0 : i32
    %c0_i32_54 = arith.constant 0 : i32
    %55 = tpu.memref_slice %arg2[%c0_i32_53, %c0_i32_54] : memref<32x128xf32, #tpu.memory_space<any>> -> memref<1x128xf32, #tpu.memory_space<any>>
    %c0_i32_55 = arith.constant 0 : i32
    %c0_i32_56 = arith.constant 0 : i32
    %56 = tpu.memref_slice %arg6[%c0_i32_55, %c0_i32_56] : memref<8x128xf32, #tpu.memory_space<vmem>> -> memref<1x128xf32, #tpu.memory_space<vmem>>
    tpu.wait_dma2 semaphore(%arg7 : memref<!tpu.dma_semaphore, #tpu.memory_space<semaphore_mem>>) src(%55 : memref<1x128xf32, #tpu.memory_space<any>>) dst(%56 : memref<1x128xf32, #tpu.memory_space<vmem>>)
    %c0 = arith.constant 0 : index
    %c0_57 = arith.constant 0 : index
    %57 = vector.load %arg6[%c0, %c0_57] : memref<8x128xf32, #tpu.memory_space<vmem>>, vector<8x128xf32>
    %c0_58 = arith.constant 0 : index
    %c0_59 = arith.constant 0 : index
    %58 = vector.load %arg3[%c0_58, %c0_59] : memref<128x128xf32, #tpu.memory_space<vmem>>, vector<128x128xf32>
    %cst = arith.constant dense<0.000000e+00> : vector<8x128xf32>
    %59 = tpu.matmul %57, %58, %cst {dimension_numbers = #tpu.dot_dimension_numbers<[1], [0], [0], [1], [0, 0, 1, 1], [], []>} : vector<8x128xf32>, vector<128x128xf32>, vector<8x128xf32> -> vector<8x128xf32>
    %c0_60 = arith.constant 0 : index
    %c0_61 = arith.constant 0 : index
    %60 = vector.load %arg4[%c0_60, %c0_61] : memref<1x128xf32, #tpu.memory_space<vmem>>, vector<1x128xf32>
    %61 = vector.broadcast %60 : vector<1x128xf32> to vector<8x128xf32>
    %62 = arith.addf %59, %61 : vector<8x128xf32>
    %c0_62 = arith.constant 0 : index
    %c0_63 = arith.constant 0 : index
    %63 = vector.load %arg5[%c0_62, %c0_63] : memref<8x128xf32, #tpu.memory_space<vmem>>, vector<8x128xf32>
    tpu.vector_store %arg5[%c0_62, %c0_63], %62 {strides = array<i32>} : memref<8x128xf32, #tpu.memory_space<vmem>>, vector<8x128xf32>,
    return
  }
  func.func @transform_1(%arg0: i32, %arg1: memref<16xi32, #tpu.memory_space<smem>>) -> (i32, i32) {
    %c0_i32 = arith.constant 0 : i32
    %c0_i32_0 = arith.constant 0 : i32
    %c0_i32_1 = arith.constant 0 : i32
    return %c0_i32, %c0_i32_0 : i32, i32
  }
  func.func @transform_2(%arg0: i32, %arg1: memref<16xi32, #tpu.memory_space<smem>>) -> (i32, i32) {
    %c0_i32 = arith.constant 0 : i32
    %c0_i32_0 = arith.constant 0 : i32
    %c0_i32_1 = arith.constant 0 : i32
    return %c0_i32, %c0_i32_0 : i32, i32
  }
  func.func @transform_3(%arg0: i32, %arg1: memref<16xi32, #tpu.memory_space<smem>>) -> (i32, i32) {
    %c0_i32 = arith.constant 0 : i32
    %c0_i32_0 = arith.constant 0 : i32
    return %arg0, %c0_i32 : i32, i32
  }
}

</mosaic_0001>

<bundles_post_ra>
// kernel: tpu_custom_call.1
= control target key start
LH: loop header
LB: loop body
LE: loop exit
PB: predicated region body
PF: predicated region fallthrough
CT: control target
= control target key end

     0   :  { %s812_s18 = smov [#allocation5]   ;;  %s1049_s0 = inlined_call_operand.hbm [shape: s32[16], index: 0, kind: input, shape index: {}]   ;;  %s1050_s1 = inlined_call_operand.hbm [shape: f32[32,128], index: 1, kind: input, shape index: {}]   ;;  %s1051_s2 = inlined_call_operand.hbm [shape: f32[128,128], index: 2, kind: input, shape index: {}]   ;;  %s1052_s3 = inlined_call_operand.vmem [shape: f32[1,128], index: 3, kind: input, shape index: {}]   ;;  %s1053_s4 = inlined_call_operand.hbm [shape: f32[16,128], index: 4, kind: output, shape index: {}]  }
   0x1   :  { %1056 = sst [smem:[#allocation33_spill]] %s1051_s2  ;;  %s10_s17 = sshll.u32 %s1049_s0, 4  ;;  %s11_s17 = int_to_ptr.hbm [resolvable:$true] %s10_s17 }
   0x2   :  { %13 = dma.hbm_to_smem %s11_s17, 16, %s812_s18, [#allocation4] }
   0x3   :  { %784 = dma.done.wait [#allocation4], 16 }
   0x4   :  { %785 = vsyncadd [#allocation4], 4294967280 }
   0x5   :  { %16 = sfence }
   0x6   :  { %17 = vsyncpa [#allocation7], 0 }
   0x7   :  { %18 = vsyncpa [#allocation8], 0 }
   0x8   :  { %20 = vsyncpa [#allocation8 + $0x1], 0  ;;  %s852_s19 = smov 0   ;;  %s854_s20 = smov 0  }
   0x9   :  { %s856_s21 = smov 0   ;;  %s858_s22 = smov 0  }
   0xa LB: > { %s873_s0 = sadd.s32 4294967295, %s810_s22   ;;  %s432_s23 = sadd.s32 4294967294, %s810_s22   ;;  %s810_s22 = sphi %s858_s22, %s1067_s22   ;;  %s806_s21 = sphi %s856_s21, %s1066_s21   ;;  %s802_s20 = sphi %s854_s20, %s1065_s20   ;;  %s798_s19 = sphi %s852_s19, %s1064_s19  }
   0xb   : > { %s877_s24 = sadd.s32 1, %s810_s22   ;;  %s75_s25 = sadd.s32 1, %s806_s21 }
   0xc   : > { %s72_s26 = ssub.s32 %s810_s22, %s877_s24  ;;  %p85_p0 = scmp.ne.s32.totalorder %s806_s21, %s802_s20 }
   0xd   : > { %p73_p1 = scmp.eq.s32.totalorder %s72_s26, 0  ;;  %p86_p2 = scmp.eq.s32.totalorder %s873_s0, 1 }
   0xe   : > { %p91_p3 = scmp.ne.s32.totalorder %s802_s20, %s798_s19  ;;  %p92_p4 = scmp.eq.s32.totalorder %s432_s23, 1 }
   0xf   : > { %s888_s27 = scalar_select %p73_p1, %s806_s21, %s75_s25  }
  0x10   : > { %p890_p5 = por %p86_p2, %p85_p0  ;;  %p894_p6 = por %p92_p4, %p91_p3 }
  0x11   : > { %p433_p7 = scmp.ge.s32.totalorder %s810_s22, 1  ;;  %p99_p8 = scmp.lt.s32.totalorder %s810_s22, 3 }
  0x12   : > { %p458_p9 = scmp.eq.s32.totalorder %s873_s0, 0  ;;  %s1059_s2 = sld [smem:[#allocation33_spill]] }
  0x13   : > { %p100_p10 = pnand %p433_p7, %p99_p8  ;;  %s813_s7 = smov [#allocation6]  }
  0x14   : > { %s112_s8 = sshll.u32 %s813_s7, 4  ;;  %s814_s9 = smov 128   ;;  %s113_s8 = int_to_ptr.vmem [resolvable:$true] %s112_s8 }
  0x15   : > { %p450_p11 = pneg %p100_p10  ;;  %s815_s10 = smov 8  }
  0x16   : > { %131 = sbr.rel (%p100_p10) target bundleno = 303 (0x12f), region = 28 }
  0x17   : > { %p451_p12 = pnand %p458_p9, %p450_p11 }
  0x18   : > { %s110_s6 = sshll.u32 %s1059_s2, 4  ;;  %s111_s6 = int_to_ptr.hbm [resolvable:$true] %s110_s6 }
  0x19   : > { %453 = dma.hbm_to_vmem [thread:$0]  (!%p451_p12), %s111_s6, 2048, %s113_s8, [#allocation7], %s814_s9, %s814_s9, %s815_s10  }
  0x1b   : > { %787 = dma.done.wait (%p458_p9), [#allocation7], 2048  }
  0x1c   : > { %789 = vsyncadd (%p458_p9), [#allocation7], 4294965248  ;;  %s1054_s11 = sand.u32 1, %s802_s20   ;;  %s912_s12 = sshll.u32 %s873_s0, 3 }
  0x1d   : > { %s916_s13 = sshll.u32 %s1054_s11, 3  ;;  %s150_s14 = sld [smem:[#allocation5 + %s912_s12]] }
  0x1e   : > { %s816_s15 = smov [#allocation2]   ;;  %s165_s17 = sadd.s32 1, %s912_s12 }
  0x1f   : > { %s161_s16 = sshll.u32 %s816_s15, 4  ;;  %s166_s18 = sld [smem:[#allocation5 + %s165_s17]]  ;;  %s162_s16 = int_to_ptr.vmem [resolvable:$true] %s161_s16 }
  0x20   : > { %s182_s23 = sadd.s32 2, %s912_s12  ;;  %s817_s25 = smov [#allocation2 + $0x1]  }
  0x21   : > { %s921_s26 = sshll.u32 %s817_s25, 4  ;;  %s183_s30 = sld [smem:[#allocation5 + %s182_s23]]  ;;  %s179_s26 = int_to_ptr.vmem [resolvable:$true] %s921_s26 }
  0x22   : > { %s818_s8 = smov [#allocation2 + $0x2]   ;;  %s932_s25 = scalar_lea.hbm %s1050_s1, 32 }
  0x23   : > { %s151_s6 = scalar_lea.hbm %s1050_s1, %s150_s14  ;;  %s927_s9 = sshll.u32 %s818_s8, 4  ;;  %s196_s9 = int_to_ptr.vmem [resolvable:$true] %s927_s9 }
  0x24   : > { %s159_s7 = sshll.u32 %s151_s6, 4  ;;  %s160_s7 = int_to_ptr.hbm [resolvable:$true] %s159_s7 }
  0x25   : > { %s548_s10 = sshra.s32 %s160_s7, 4  ;;  %s549_s10 = int_to_ptr.hbm [resolvable:$true] %s548_s10 }
  0x26   : > { %s550_s15 = scalar_lea.hbm %s549_s10, 1  ;;  %p553_p0 = scmp.lt.s32.totalorder %s549_s10, %s1050_s1 }
  0x27   : > { %p551_p13 = scmp.ne.s32.totalorder %s549_s10, %s550_s15  ;;  %p554_p1 = scmp.lt.s32.totalorder %s932_s25, %s550_s15 }
  0x29   : > { %p555_p2 = por %p554_p1, %p553_p0 }
  0x2b   : > { %p556_p3 = pnand %p555_p2, %p551_p13 }
  0x2d   : > { %559 = shalt.err (!%p556_p3)  }
  0x2e   : > { %164 = dma.hbm_to_vmem [thread:$0]  %s160_s7, 16, %s162_s16, [#allocation3] }
  0x2f   : > { %s167_s5 = scalar_lea.hbm %s1050_s1, %s166_s18  ;;  %s184_s17 = scalar_lea.hbm %s1050_s1, %s183_s30 }
  0x30   : > { %s176_s11 = sshll.u32 %s167_s5, 4  ;;  %s193_s2 = sshll.u32 %s184_s17, 4  ;;  %s177_s11 = int_to_ptr.hbm [resolvable:$true] %s176_s11  ;;  %s194_s2 = int_to_ptr.hbm [resolvable:$true] %s193_s2 }
  0x31   : > { %s572_s10 = sshra.s32 %s177_s11, 4  ;;  %s573_s10 = int_to_ptr.hbm [resolvable:$true] %s572_s10 }
  0x32   : > { %s574_s15 = scalar_lea.hbm %s573_s10, 1  ;;  %p577_p7 = scmp.lt.s32.totalorder %s573_s10, %s1050_s1 }
  0x33   : > { %p575_p4 = scmp.ne.s32.totalorder %s573_s10, %s574_s15  ;;  %p578_p8 = scmp.lt.s32.totalorder %s932_s25, %s574_s15 }
  0x35   : > { %p579_p9 = por %p578_p8, %p577_p7 }
  0x37   : > { %p580_p10 = pnand %p579_p9, %p575_p4 }
  0x39   : > { %583 = shalt.err (!%p580_p10)  }
  0x3a   : > { %181 = dma.hbm_to_vmem [thread:$0]  %s177_s11, 16, %s179_s26, [#allocation3] }
  0x3b   : > { %s199_s18 = sadd.s32 3, %s912_s12  ;;  %s596_s30 = sshra.s32 %s194_s2, 4  ;;  %s597_s30 = int_to_ptr.hbm [resolvable:$true] %s596_s30 }
  0x3c   : > { %s598_s7 = scalar_lea.hbm %s597_s30, 1  ;;  %p601_p12 = scmp.lt.s32.totalorder %s597_s30, %s1050_s1 }
  0x3d   : > { %p599_p11 = scmp.ne.s32.totalorder %s597_s30, %s598_s7  ;;  %p602_p13 = scmp.lt.s32.totalorder %s932_s25, %s598_s7 }
  0x3f   : > { %p603_p0 = por %p602_p13, %p601_p12 }
  0x41   : > { %p604_p1 = pnand %p603_p0, %p599_p11 }
  0x43   : > { %607 = shalt.err (!%p604_p1)  }
  0x44   : > { %198 = dma.hbm_to_vmem [thread:$0]  %s194_s2, 16, %s196_s9, [#allocation3] }
  0x45   : > { %s200_s5 = sld [smem:[#allocation5 + %s199_s18]]  ;;  %s819_s6 = smov [#allocation2 + $0x3]  }
  0x46   : > { %s212_s26 = sshll.u32 %s819_s6, 4  ;;  %s216_s11 = sadd.s32 4, %s912_s12  ;;  %s213_s26 = int_to_ptr.vmem [resolvable:$true] %s212_s26 }
  0x47   : > { %s217_s8 = sld [smem:[#allocation5 + %s216_s11]]  ;;  %s233_s17 = sadd.s32 5, %s912_s12 }
  0x48   : > { %s820_s10 = smov [#allocation2 + $0x4]   ;;  %s234_s23 = sld [smem:[#allocation5 + %s233_s17]] }
  0x49   : > { %s958_s15 = sshll.u32 %s820_s10, 4  ;;  %s821_s2 = smov [#allocation2 + $0x5]  }
  0x4a   : > { %1060 = sst [smem:[#allocation32_spill]] %s958_s15  ;;  %s964_s7 = sshll.u32 %s821_s2, 4  ;;  %s247_s7 = int_to_ptr.vmem [resolvable:$true] %s964_s7 }
  0x4b   : > { %s201_s9 = scalar_lea.hbm %s1050_s1, %s200_s5 }
  0x4c   : > { %s210_s18 = sshll.u32 %s201_s9, 4  ;;  %s211_s18 = int_to_ptr.hbm [resolvable:$true] %s210_s18 }
  0x4d   : > { %s218_s6 = scalar_lea.hbm %s1050_s1, %s217_s8  ;;  %s620_s11 = sshra.s32 %s211_s18, 4  ;;  %s621_s11 = int_to_ptr.hbm [resolvable:$true] %s620_s11 }
  0x4e   : > { %s622_s10 = scalar_lea.hbm %s621_s11, 1  ;;  %p625_p3 = scmp.lt.s32.totalorder %s621_s11, %s1050_s1 }
  0x4f   : > { %p623_p2 = scmp.ne.s32.totalorder %s621_s11, %s622_s10  ;;  %p626_p4 = scmp.lt.s32.totalorder %s932_s25, %s622_s10 }
  0x51   : > { %p627_p7 = por %p626_p4, %p625_p3 }
  0x53   : > { %p628_p8 = pnand %p627_p7, %p623_p2 }
  0x55   : > { %631 = shalt.err (!%p628_p8)  }
  0x56   : > { %215 = dma.hbm_to_vmem [thread:$0]  %s211_s18, 16, %s213_s26, [#allocation3] }
  0x57   : > { %s227_s5 = sshll.u32 %s218_s6, 4  ;;  %s235_s9 = scalar_lea.hbm %s1050_s1, %s234_s23  ;;  %s228_s5 = int_to_ptr.hbm [resolvable:$true] %s227_s5 }
  0x58   : > { %s244_s8 = sshll.u32 %s235_s9, 4  ;;  %s644_s2 = sshra.s32 %s228_s5, 4  ;;  %s645_s2 = int_to_ptr.hbm [resolvable:$true] %s644_s2  ;;  %s245_s8 = int_to_ptr.hbm [resolvable:$true] %s244_s8 }
  0x59   : > { %s646_s14 = scalar_lea.hbm %s645_s2, 1  ;;  %p649_p10 = scmp.lt.s32.totalorder %s645_s2, %s1050_s1 }
  0x5a   : > { %p647_p9 = scmp.ne.s32.totalorder %s645_s2, %s646_s14  ;;  %p650_p11 = scmp.lt.s32.totalorder %s932_s25, %s646_s14 }
  0x5c   : > { %p651_p12 = por %p650_p11, %p649_p10 }
  0x5e   : > { %p652_p13 = pnand %p651_p12, %p647_p9 }
  0x60   : > { %655 = shalt.err (!%p652_p13)  }
  0x61   : > { %s1061_s26 = sld [smem:[#allocation32_spill]]  ;;  %s250_s23 = sadd.s32 6, %s912_s12 }
  0x62   : > { %s668_s6 = sshra.s32 %s245_s8, 4  ;;  %s669_s6 = int_to_ptr.hbm [resolvable:$true] %s668_s6 }
  0x63   : > { %s670_s11 = scalar_lea.hbm %s669_s6, 1  ;;  %p673_p1 = scmp.lt.s32.totalorder %s669_s6, %s1050_s1 }
  0x64   : > { %p671_p0 = scmp.ne.s32.totalorder %s669_s6, %s670_s11  ;;  %p674_p2 = scmp.lt.s32.totalorder %s932_s25, %s670_s11 }
  0x66   : > { %p675_p3 = por %p674_p2, %p673_p1 }
  0x67   : > { %s1062_s18 = int_to_ptr.vmem [resolvable:$true] %s1061_s26 }
  0x68   : > { %232 = dma.hbm_to_vmem [thread:$0]  %s228_s5, 16, %s1062_s18, [#allocation3] }
  0x69   : > { %p676_p4 = pnand %p675_p3, %p671_p0 }
  0x6b   : > { %679 = shalt.err (!%p676_p4)  }
  0x6c   : > { %249 = dma.hbm_to_vmem [thread:$0]  %s245_s8, 16, %s247_s7, [#allocation3] }
  0x6d   : > { %s251_s16 = sld [smem:[#allocation5 + %s250_s23]]  ;;  %s267_s5 = sadd.s32 7, %s912_s12 }
  0x6e   : > { %s268_s30 = sld [smem:[#allocation5 + %s267_s5]]  ;;  %s822_s9 = smov [#allocation2 + $0x6]  }
  0x6f   : > { %s263_s2 = sshll.u32 %s822_s9, 4  ;;  %s823_s14 = smov [#allocation2 + $0x7]   ;;  %s264_s2 = int_to_ptr.vmem [resolvable:$true] %s263_s2 }
  0x70   : > { %s991_s0 = sshll.u32 %s823_s14, 4  ;;  %s281_s0 = int_to_ptr.vmem [resolvable:$true] %s991_s0 }
  0x73   : > { %s252_s18 = scalar_lea.hbm %s1050_s1, %s251_s16 }
  0x74   : > { %s261_s6 = sshll.u32 %s252_s18, 4  ;;  %s269_s8 = scalar_lea.hbm %s1050_s1, %s268_s30  ;;  %s262_s6 = int_to_ptr.hbm [resolvable:$true] %s261_s6 }
  0x75   : > { %s692_s23 = sshra.s32 %s262_s6, 4  ;;  %s693_s23 = int_to_ptr.hbm [resolvable:$true] %s692_s23 }
  0x76   : > { %s694_s10 = scalar_lea.hbm %s693_s23, 1  ;;  %p697_p8 = scmp.lt.s32.totalorder %s693_s23, %s1050_s1 }
  0x77   : > { %p695_p7 = scmp.ne.s32.totalorder %s693_s23, %s694_s10  ;;  %p698_p9 = scmp.lt.s32.totalorder %s932_s25, %s694_s10 }
  0x79   : > { %p699_p10 = por %p698_p9, %p697_p8 }
  0x7b   : > { %p700_p11 = pnand %p699_p10, %p695_p7 }
  0x7d   : > { %703 = shalt.err (!%p700_p11)  }
  0x7e   : > { %266 = dma.hbm_to_vmem [thread:$0]  %s262_s6, 16, %s264_s2, [#allocation3] }
  0x7f   : > { %s278_s16 = sshll.u32 %s269_s8, 4  ;;  %s279_s16 = int_to_ptr.hbm [resolvable:$true] %s278_s16 }
  0x80   : > { %s716_s9 = sshra.s32 %s279_s16, 4  ;;  %s717_s9 = int_to_ptr.hbm [resolvable:$true] %s716_s9 }
  0x81   : > { %s718_s14 = scalar_lea.hbm %s717_s9, 1  ;;  %p721_p13 = scmp.lt.s32.totalorder %s717_s9, %s1050_s1 }
  0x82   : > { %p719_p12 = scmp.ne.s32.totalorder %s717_s9, %s718_s14  ;;  %p722_p0 = scmp.lt.s32.totalorder %s932_s25, %s718_s14 }
  0x84   : > { %p723_p1 = por %p722_p0, %p721_p13 }
  0x86   : > { %p724_p2 = pnand %p723_p1, %p719_p12 }
  0x88   : > { %727 = shalt.err (!%p724_p2)  }
  0x89   : > { %283 = dma.hbm_to_vmem [thread:$0]  %s279_s16, 16, %s281_s0, [#allocation3] }
  0x8a   : > { %s148_s26 = scalar_lea.vmem [#allocation9], %s916_s13 }
  0x8b   : > { %790 = dma.done.wait [#allocation3], 128 }
  0x8c   : > { %791 = vsyncadd [#allocation3], 4294967168  ;;  %v317_v0 = vld [vmem:[#allocation6 + $0x78] sm:$0xff]  ;;  %v316_v1 = vld [vmem:[#allocation6 + $0x70] sm:$0xff]  ;;  %s354_s0 = scalar_lea.hbm %s1053_s4, %s912_s12  ;;  %s356_s11 = sshll.u32 %s148_s26, 4  ;;  %s357_s11 = int_to_ptr.vmem [resolvable:$true] %s356_s11 }
  0x8d   : > { %322 = vmatpush.msra.mxu0 %v317_v0  ;;  %v315_v2 = vld [vmem:[#allocation6 + $0x68] sm:$0xff]  ;;  %v314_v3 = vld [vmem:[#allocation6 + $0x60] sm:$0xff]  ;;  %v313_v4 = vld [vmem:[#allocation6 + $0x58] sm:$0xff]  ;;  %s358_s7 = sshll.u32 %s354_s0, 4  ;;  %s1063_s8 = sand.u32 1, %s802_s20   ;;  %s359_s7 = int_to_ptr.hbm [resolvable:$true] %s358_s7 }
  0x8e   : > { %v312_v5 = vld [vmem:[#allocation6 + $0x50] sm:$0xff]  ;;  %v311_v6 = vld [vmem:[#allocation6 + $0x48] sm:$0xff]  ;;  %v310_v7 = vld [vmem:[#allocation6 + $0x40] sm:$0xff]  ;;  %s344_s23 = scalar_lea.sflag [#allocation8], %s1063_s8  ;;  %s754_s10 = sshra.s32 %s359_s7, 4  ;;  %s755_s10 = int_to_ptr.hbm [resolvable:$true] %s754_s10 }
  0x8f   : > { %323 = vmatpush.msra.mxu0 %v316_v1  ;;  %v309_v8 = vld [vmem:[#allocation6 + $0x38] sm:$0xff]  ;;  %v308_v9 = vld [vmem:[#allocation6 + $0x30] sm:$0xff]  ;;  %v307_v10 = vld [vmem:[#allocation6 + $0x28] sm:$0xff]  ;;  %s756_s17 = scalar_lea.hbm %s755_s10, 8  ;;  %s760_s16 = scalar_lea.hbm %s1053_s4, 16 }
  0x90   : > { %v306_v11 = vld [vmem:[#allocation6 + $0x20] sm:$0xff]  ;;  %v305_v12 = vld [vmem:[#allocation6 + $0x18] sm:$0xff]  ;;  %v304_v13 = vld [vmem:[#allocation6 + $0x10] sm:$0xff]  ;;  %p757_p3 = scmp.ne.s32.totalorder %s755_s10, %s756_s17  ;;  %p761_p8 = scmp.lt.s32.totalorder %s755_s10, %s1053_s4 }
  0x91   : > { %324 = vmatpush.msra.mxu0 %v315_v2  ;;  %v303_v14 = vld [vmem:[#allocation6 + $0x8] sm:$0xff]  ;;  %v302_v15 = vld [vmem:[#allocation6] sm:$0xff]  ;;  %v301_v16 = vld [vmem:[#allocation2] sm:$0xff]  ;;  %p762_p9 = scmp.lt.s32.totalorder %s760_s16, %s756_s17 }
  0x92   : > { %v505_v17 = vld [vmem:[%s1052_s3] ss:$0 sm:$0xff]  ;;  %p758_p4 = pnand %p757_p3, %p890_p5 }
  0x93   : > { %325 = vmatpush.msra.mxu0 %v314_v3  ;;  %p763_p10 = por %p762_p9, %p761_p8 }
  0x94   : > { %p759_p7 = pneg %p758_p4 }
  0x95   : > { %326 = vmatpush.msra.mxu0 %v313_v4 }
  0x96   : > { %p764_p11 = pnand %p763_p10, %p759_p7 }
  0x97   : > { %327 = vmatpush.msra.mxu0 %v312_v5 }
  0x99   : > { %328 = vmatpush.msra.mxu0 %v311_v6 }
  0x9b   : > { %329 = vmatpush.msra.mxu0 %v310_v7 }
  0x9d   : > { %330 = vmatpush.msra.mxu0 %v309_v8 }
  0x9f   : > { %331 = vmatpush.msra.mxu0 %v308_v9 }
  0xa1   : > { %332 = vmatpush.msra.mxu0 %v307_v10 }
  0xa3   : > { %333 = vmatpush.msra.mxu0 %v306_v11 }
  0xa5   : > { %334 = vmatpush.msra.mxu0 %v305_v12 }
  0xa7   : > { %335 = vmatpush.msra.mxu0 %v304_v13 }
  0xa9   : > { %336 = vmatpush.msra.mxu0 %v303_v14 }
  0xab   : > { %337 = vmatpush.msra.mxu0 %v302_v15 }
  0xac   : > { %338 = vmatmul.f32.vlgmr.msra.gmra.mxu0 %v301_v16 }
 0x129   : > { %v339_v18 = vpop.f32.mrf.mxu0 }
 0x12a   : > { %v340_v19 = vadd.f32 %v505_v17, %v339_v18 }
 0x12c   : > { %342 = vst [vmem:[%s148_s26] sm:$0xff] %v340_v19 }
 0x12d   : > { %767 = shalt.err (!%p764_p11)
}
 0x12e   : > { %448 = dma.vmem_to_hbm [thread:$0]  (%p890_p5), %s357_s11, 128, %s359_s7, %s344_s23  }
 0x12f PF: > { %p460_p12 = scmp.ge.s32.totalorder %s810_s22, 2  ;;  %s370_s13 = sand.u32 1, %s798_s19  }
 0x130   : > { %s371_s30 = scalar_lea.sflag [#allocation8], %s370_s13 }
 0x131   : > { %p455_p13 = pnand %p460_p12, %p894_p6 }
 0x133   : > { %p456_p0 = pneg %p455_p13 }
 0x135   : > { %793 = dma.done.wait (%p456_p0), %s371_s30, 128  }
 0x136   : > { %795 = vsyncadd (%p456_p0), %s371_s30, 4294967168  ;;  %p23_p1 = scmp.ge.s32.totalorder %s877_s24, 4   ;;  %s1064_s19 = smov %s802_s20 }
 0x137   : > { %s1065_s20 = smov %s806_s21  ;;  %s1066_s21 = smov %s888_s27 }
 0x138   : > { %s1067_s22 = smov %s877_s24  ;;  %25 = sbr.rel (!%p23_p1) target bundleno = 10 (0xa), region = 112 }
 0x13d   :  { %377 = vsyncpa [#allocation7], 1 }
 0x13e   :  { %379 = vsyncpa [#allocation7 + $0x1], 1 }
 0x13f   :  { %380 = vsyncpa [#allocation8], 1 }
 0x140   :  { %382 = vsyncpa [#allocation8 + $0x1], 1 }
 0x141   :  { %383 = vsyncmov [#allocation3] }
 0x144   :  { %s384_s22 = vpop.sfrf %383 }
 0x145   :  { %p443_p5 = scmp.ne.s32.totalorder %s384_s22, 0 }
 0x147   :  { %388 = shalt.err (%p443_p5)  }

</bundles_post_ra>
